<compile_context>
chip_gen: v7x
topology: tpu7x:2x2x1
jax: 0.10.0
libtpu: 0.0.40
codegen_flags: <defaults>
</compile_context>

<pallas_src>
import functools

import jax
import jax.numpy as jnp
from jax import lax
from jax.experimental import pallas as pl
from jax.experimental.pallas import tpu as pltpu


def _encoder_layer_kernel(
    x_ref,      # (TM, D)   input rows (f32)
    g1_ref,     # (1, D)    outer layer_norm weight (f32)
    b1_ref,     # (1, D)    outer layer_norm bias   (f32)
    g2_ref,     # (1, D)    pos_ffn layer_norm weight (f32)
    b2_ref,     # (1, D)    pos_ffn layer_norm bias   (f32)
    w1_ref,     # (D, H)    pos_ffn w_1, matmul dtype (bf16)
    bb1_ref,    # (1, H)    pos_ffn w_1 bias (f32)
    w2_ref,     # (H, D)    pos_ffn w_2, matmul dtype (bf16)
    bb2_ref,    # (1, D)    pos_ffn w_2 bias (f32)
    out_ref,    # (TM, D)   output rows
):
    # Hoist all parameter reads once (no broadcast_in_dim inside any future loop).
    g1 = g1_ref[...]
    b1 = b1_ref[...]
    g2 = g2_ref[...]
    b2 = b2_ref[...]
    bb1 = bb1_ref[...]
    bb2 = bb2_ref[...]
    w1 = w1_ref[...]
    w2 = w2_ref[...]

    x = x_ref[...].astype(jnp.float32)

    # --- outer LayerNorm (nn.LayerNorm default eps = 1e-5), f32 math ---
    mu = jnp.mean(x, axis=-1, keepdims=True)
    xc = x - mu
    var = jnp.mean(xc * xc, axis=-1, keepdims=True)
    h = xc * lax.rsqrt(var + 1e-5) * g1 + b1

    # --- seq_block (TTT) ---
    # TODO(synk): TTTLinear/TTTMLP + TTTConfig were not provided; seq_block is identity.
    seq_out = h

    # dropout (eval) is identity; residual add
    enc = seq_out + x

    # --- PositionWiseFeedForward ---
    mu2 = jnp.mean(enc, axis=-1, keepdims=True)
    ec = enc - mu2
    var2 = jnp.mean(ec * ec, axis=-1, keepdims=True)
    y = ec * lax.rsqrt(var2 + 1e-6) * g2 + b2

    # bf16 MXU operands, f32 accumulation.
    y = jnp.dot(y.astype(w1.dtype), w1, preferred_element_type=jnp.float32) + bb1
    y = jnp.maximum(y, 0.0)
    y = jnp.dot(y.astype(w2.dtype), w2, preferred_element_type=jnp.float32) + bb2

    # pos_ffn dropout (eval) is identity; residual add
    out_ref[...] = (y + enc).astype(out_ref.dtype)


def _round_up(a, b):
    return ((a + b - 1) // b) * b


def encoder_layer_forward(x, params, *, row_tile=256, matmul_dtype=jnp.bfloat16):
    """x: (B, L, D) float32. Returns (enc_output (B, L, D), attn_weights=None)."""
    B, L, D = x.shape
    M = B * L
    H = params["w1"].shape[1]

    # Row-tile sizing: as large as requested but no larger than the (8-padded)
    # problem; always a multiple of 8 (sublane granularity).
    tm = max(8, min(int(row_tile), _round_up(M, 8)))
    tm = _round_up(tm, 8)
    M_pad = _round_up(M, tm)

    x2 = x.reshape(M, D)
    if M_pad != M:
        # Zero padding is numerically safe through LayerNorm/FFN; rows are dropped below.
        x2 = jnp.pad(x2, ((0, M_pad - M), (0, 0)))

    g1 = params["ln_g"].reshape(1, D).astype(jnp.float32)
    b1 = params["ln_b"].reshape(1, D).astype(jnp.float32)
    g2 = params["ffn_ln_g"].reshape(1, D).astype(jnp.float32)
    b2 = params["ffn_ln_b"].reshape(1, D).astype(jnp.float32)
    w1 = params["w1"].astype(matmul_dtype)               # (D, H)
    bb1 = params["b1"].reshape(1, H).astype(jnp.float32)
    w2 = params["w2"].astype(matmul_dtype)               # (H, D)
    bb2 = params["b2"].reshape(1, D).astype(jnp.float32)

    full = lambda i: (0, 0)
    rows = lambda i: (i, 0)

    # VMEM budget: double-buffered in/out row tiles (f32) + resident weights
    # (conservatively counted twice) + params + intermediate headroom.
    wbytes = jnp.dtype(matmul_dtype).itemsize
    vmem_est = (
        2 * 2 * tm * D * 4
        + 2 * (D * H + H * D) * wbytes
        + (6 * D + 2 * H) * 4
        + 3 * tm * max(D, H) * 4
    )
    vmem_limit = int(min(max(2 * vmem_est, 32 * 1024 * 1024), 64 * 1024 * 1024))

    n_tiles = M_pad // tm
    cost = pl.CostEstimate(
        flops=4 * M_pad * D * H + 14 * M_pad * D,
        transcendentals=2 * M_pad,
        bytes_accessed=2 * M_pad * D * 4 + 2 * D * H * wbytes,
    )

    out2 = pl.pallas_call(
        _encoder_layer_kernel,
        out_shape=jax.ShapeDtypeStruct((M_pad, D), x.dtype),
        grid_spec=pl.GridSpec(
            grid=(n_tiles,),
            in_specs=[
                pl.BlockSpec((tm, D), rows),         # x rows
                pl.BlockSpec((1, D), full),          # g1
                pl.BlockSpec((1, D), full),          # b1
                pl.BlockSpec((1, D), full),          # g2
                pl.BlockSpec((1, D), full),          # b2
                pl.BlockSpec((D, H), full),          # w1 (constant block index -> fetched once)
                pl.BlockSpec((1, H), full),          # bb1
                pl.BlockSpec((H, D), full),          # w2
                pl.BlockSpec((1, D), full),          # bb2
            ],
            out_specs=pl.BlockSpec((tm, D), rows),
        ),
        compiler_params=pltpu.CompilerParams(
            dimension_semantics=("parallel",),
            vmem_limit_bytes=vmem_limit,
        ),
        cost_estimate=cost,
    )(x2, g1, b1, g2, b2, w1, bb1, w2, bb2)

    out = out2[:M].reshape(B, L, D)
    return out, None


def init_params(key, d_model, d_inner):
    """Deterministic parameter init matching module shapes (is_invert=True)."""
    k1, k2, k3, k4 = jax.random.split(key, 4)
    scale1 = 1.0 / jnp.sqrt(d_model)
    scale2 = 1.0 / jnp.sqrt(d_inner)
    return {
        # outer self.layer_norm = nn.LayerNorm(len_dff)
        "ln_g": jnp.ones((d_model,), jnp.float32),
        "ln_b": jnp.zeros((d_model,), jnp.float32),
        # pos_ffn.layer_norm = nn.LayerNorm(len_dff, eps=1e-6)
        "ffn_ln_g": jnp.ones((d_model,), jnp.float32),
        "ffn_ln_b": jnp.zeros((d_model,), jnp.float32),
        # pos_ffn.w_1 = nn.Linear(len_dff, d_inner): stored as (d_in, d_hid)
        "w1": jax.random.uniform(k1, (d_model, d_inner), jnp.float32, -scale1, scale1),
        "b1": jax.random.uniform(k2, (d_inner,), jnp.float32, -scale1, scale1),
        # pos_ffn.w_2 = nn.Linear(d_inner, len_dff): stored as (d_hid, d_in)
        "w2": jax.random.uniform(k3, (d_inner, d_model), jnp.float32, -scale2, scale2),
        "b2": jax.random.uniform(k4, (d_model,), jnp.float32, -scale2, scale2),
    }


if __name__ == "__main__":
    # Small config: B=2, seq_len L=8, len_dff D=128 (lane-dense), d_lower H=128.
    B, L, D, H = 2, 8, 128, 128

    key = jax.random.PRNGKey(0)
    kx, kp = jax.random.split(key)
    x = jax.random.normal(kx, (B, L, D), jnp.float32)
    params = init_params(kp, D, H)

    fwd = jax.jit(functools.partial(encoder_layer_forward, row_tile=256))
    enc_output, attn_weights = fwd(x, params)
    jax.block_until_ready(enc_output)

    assert enc_output.shape == (B, L, D)
    assert jnp.all(jnp.isfinite(enc_output))
    print("KERNEL_OK")
</pallas_src>

<mosaic_0001>
module attributes {stable_mosaic.version = 11 : i64} {
  func.func @_encoder_layer_kernel(%arg0: i32, %arg1: memref<16x128xf32, #tpu.memory_space<vmem>>, %arg2: memref<1x128xf32, #tpu.memory_space<vmem>>, %arg3: memref<1x128xf32, #tpu.memory_space<vmem>>, %arg4: memref<1x128xf32, #tpu.memory_space<vmem>>, %arg5: memref<1x128xf32, #tpu.memory_space<vmem>>, %arg6: memref<128x128xbf16, #tpu.memory_space<vmem>>, %arg7: memref<1x128xf32, #tpu.memory_space<vmem>>, %arg8: memref<128x128xbf16, #tpu.memory_space<vmem>>, %arg9: memref<1x128xf32, #tpu.memory_space<vmem>>, %arg10: memref<16x128xf32, #tpu.memory_space<vmem>>) attributes {dimension_semantics = [#tpu.dimension_semantics<parallel>], iteration_bounds = array<i64: 1>, scalar_prefetch = 0 : i64, scratch_operands = 0 : i64, tpu.core_type = #tpu.core_type<tc>, window_params = [{transform_indices = @transform_0, window_bounds = array<i64: 16, 128>}, {pipeline_mode = #tpu.pipeline_mode<synchronous>, transform_indices = @transform_1, window_bounds = array<i64: 1, 128>}, {pipeline_mode = #tpu.pipeline_mode<synchronous>, transform_indices = @transform_2, window_bounds = array<i64: 1, 128>}, {pipeline_mode = #tpu.pipeline_mode<synchronous>, transform_indices = @transform_3, window_bounds = array<i64: 1, 128>}, {pipeline_mode = #tpu.pipeline_mode<synchronous>, transform_indices = @transform_4, window_bounds = array<i64: 1, 128>}, {pipeline_mode = #tpu.pipeline_mode<synchronous>, transform_indices = @transform_5, window_bounds = array<i64: 128, 128>}, {pipeline_mode = #tpu.pipeline_mode<synchronous>, transform_indices = @transform_6, window_bounds = array<i64: 1, 128>}, {pipeline_mode = #tpu.pipeline_mode<synchronous>, transform_indices = @transform_7, window_bounds = array<i64: 128, 128>}, {pipeline_mode = #tpu.pipeline_mode<synchronous>, transform_indices = @transform_8, window_bounds = array<i64: 1, 128>}, {transform_indices = @transform_9, window_bounds = array<i64: 16, 128>}]} {
    %c0 = arith.constant 0 : index
    %c0_0 = arith.constant 0 : index
    %0 = vector.load %arg2[%c0, %c0_0] : memref<1x128xf32, #tpu.memory_space<vmem>>, vector<1x128xf32>
    %c0_1 = arith.constant 0 : index
    %c0_2 = arith.constant 0 : index
    %1 = vector.load %arg3[%c0_1, %c0_2] : memref<1x128xf32, #tpu.memory_space<vmem>>, vector<1x128xf32>
    %c0_3 = arith.constant 0 : index
    %c0_4 = arith.constant 0 : index
    %2 = vector.load %arg4[%c0_3, %c0_4] : memref<1x128xf32, #tpu.memory_space<vmem>>, vector<1x128xf32>
    %c0_5 = arith.constant 0 : index
    %c0_6 = arith.constant 0 : index
    %3 = vector.load %arg5[%c0_5, %c0_6] : memref<1x128xf32, #tpu.memory_space<vmem>>, vector<1x128xf32>
    %c0_7 = arith.constant 0 : index
    %c0_8 = arith.constant 0 : index
    %4 = vector.load %arg7[%c0_7, %c0_8] : memref<1x128xf32, #tpu.memory_space<vmem>>, vector<1x128xf32>
    %c0_9 = arith.constant 0 : index
    %c0_10 = arith.constant 0 : index
    %5 = vector.load %arg9[%c0_9, %c0_10] : memref<1x128xf32, #tpu.memory_space<vmem>>, vector<1x128xf32>
    %c0_11 = arith.constant 0 : index
    %c0_12 = arith.constant 0 : index
    %6 = vector.load %arg6[%c0_11, %c0_12] : memref<128x128xbf16, #tpu.memory_space<vmem>>, vector<128x128xbf16>
    %c0_13 = arith.constant 0 : index
    %c0_14 = arith.constant 0 : index
    %7 = vector.load %arg8[%c0_13, %c0_14] : memref<128x128xbf16, #tpu.memory_space<vmem>>, vector<128x128xbf16>
    %c0_15 = arith.constant 0 : index
    %c0_16 = arith.constant 0 : index
    %8 = vector.load %arg1[%c0_15, %c0_16] : memref<16x128xf32, #tpu.memory_space<vmem>>, vector<16x128xf32>
    %cst = arith.constant dense<0.000000e+00> : vector<16xf32>
    %9 = vector.multi_reduction <add>, %8, %cst [1] : vector<16x128xf32> to vector<16xf32>
    %10 = vector.shape_cast %9 : vector<16xf32> to vector<16x1xf32>
    %cst_17 = arith.constant 1.280000e+02 : f32
    %11 = vector.broadcast %cst_17 : f32 to vector<16x1xf32>
    %12 = arith.divf %10, %11 : vector<16x1xf32>
    %13 = vector.broadcast %12 : vector<16x1xf32> to vector<16x128xf32>
    %14 = arith.subf %8, %13 : vector<16x128xf32>
    %15 = arith.mulf %14, %14 : vector<16x128xf32>
    %cst_18 = arith.constant dense<0.000000e+00> : vector<16xf32>
    %16 = vector.multi_reduction <add>, %15, %cst_18 [1] : vector<16x128xf32> to vector<16xf32>
    %17 = vector.shape_cast %16 : vector<16xf32> to vector<16x1xf32>
    %cst_19 = arith.constant 1.280000e+02 : f32
    %18 = vector.broadcast %cst_19 : f32 to vector<16x1xf32>
    %19 = arith.divf %17, %18 : vector<16x1xf32>
    %cst_20 = arith.constant 9.99999974E-6 : f32
    %20 = vector.broadcast %cst_20 : f32 to vector<16x1xf32>
    %21 = arith.addf %19, %20 : vector<16x1xf32>
    %22 = math.rsqrt %21 : vector<16x1xf32>
    %23 = vector.broadcast %22 : vector<16x1xf32> to vector<16x128xf32>
    %24 = arith.mulf %14, %23 : vector<16x128xf32>
    %25 = vector.broadcast %0 : vector<1x128xf32> to vector<16x128xf32>
    %26 = arith.mulf %24, %25 : vector<16x128xf32>
    %27 = vector.broadcast %1 : vector<1x128xf32> to vector<16x128xf32>
    %28 = arith.addf %26, %27 : vector<16x128xf32>
    %29 = arith.addf %28, %8 : vector<16x128xf32>
    %cst_21 = arith.constant dense<0.000000e+00> : vector<16xf32>
    %30 = vector.multi_reduction <add>, %29, %cst_21 [1] : vector<16x128xf32> to vector<16xf32>
    %31 = vector.shape_cast %30 : vector<16xf32> to vector<16x1xf32>
    %cst_22 = arith.constant 1.280000e+02 : f32
    %32 = vector.broadcast %cst_22 : f32 to vector<16x1xf32>
    %33 = arith.divf %31, %32 : vector<16x1xf32>
    %34 = vector.broadcast %33 : vector<16x1xf32> to vector<16x128xf32>
    %35 = arith.subf %29, %34 : vector<16x128xf32>
    %36 = arith.mulf %35, %35 : vector<16x128xf32>
    %cst_23 = arith.constant dense<0.000000e+00> : vector<16xf32>
    %37 = vector.multi_reduction <add>, %36, %cst_23 [1] : vector<16x128xf32> to vector<16xf32>
    %38 = vector.shape_cast %37 : vector<16xf32> to vector<16x1xf32>
    %cst_24 = arith.constant 1.280000e+02 : f32
    %39 = vector.broadcast %cst_24 : f32 to vector<16x1xf32>
    %40 = arith.divf %38, %39 : vector<16x1xf32>
    %cst_25 = arith.constant 9.99999997E-7 : f32
    %41 = vector.broadcast %cst_25 : f32 to vector<16x1xf32>
    %42 = arith.addf %40, %41 : vector<16x1xf32>
    %43 = math.rsqrt %42 : vector<16x1xf32>
    %44 = vector.broadcast %43 : vector<16x1xf32> to vector<16x128xf32>
    %45 = arith.mulf %35, %44 : vector<16x128xf32>
    %46 = vector.broadcast %2 : vector<1x128xf32> to vector<16x128xf32>
    %47 = arith.mulf %45, %46 : vector<16x128xf32>
    %48 = vector.broadcast %3 : vector<1x128xf32> to vector<16x128xf32>
    %49 = arith.addf %47, %48 : vector<16x128xf32>
    %50 = arith.truncf %49 : vector<16x128xf32> to vector<16x128xbf16>
    %cst_26 = arith.constant dense<0.000000e+00> : vector<16x128xf32>
    %51 = tpu.matmul %50, %6, %cst_26 {dimension_numbers = #tpu.dot_dimension_numbers<[1], [0], [0], [1], [0, 0, 1, 1], [], []>} : vector<16x128xbf16>, vector<128x128xbf16>, vector<16x128xf32> -> vector<16x128xf32>
    %52 = vector.broadcast %4 : vector<1x128xf32> to vector<16x128xf32>
    %53 = arith.addf %51, %52 : vector<16x128xf32>
    %cst_27 = arith.constant 0.000000e+00 : f32
    %54 = vector.broadcast %cst_27 : f32 to vector<16x128xf32>
    %55 = arith.maximumf %53, %54 : vector<16x128xf32>
    %56 = arith.truncf %55 : vector<16x128xf32> to vector<16x128xbf16>
    %cst_28 = arith.constant dense<0.000000e+00> : vector<16x128xf32>
    %57 = tpu.matmul %56, %7, %cst_28 {dimension_numbers = #tpu.dot_dimension_numbers<[1], [0], [0], [1], [0, 0, 1, 1], [], []>} : vector<16x128xbf16>, vector<128x128xbf16>, vector<16x128xf32> -> vector<16x128xf32>
    %58 = vector.broadcast %5 : vector<1x128xf32> to vector<16x128xf32>
    %59 = arith.addf %57, %58 : vector<16x128xf32>
    %60 = arith.addf %59, %29 : vector<16x128xf32>
    %c0_29 = arith.constant 0 : index
    %c0_30 = arith.constant 0 : index
    %61 = vector.load %arg10[%c0_29, %c0_30] : memref<16x128xf32, #tpu.memory_space<vmem>>, vector<16x128xf32>
    tpu.vector_store %arg10[%c0_29, %c0_30], %60 {strides = array<i32>} : memref<16x128xf32, #tpu.memory_space<vmem>>, vector<16x128xf32>,
    return
  }
  func.func @transform_0(%arg0: i32) -> (i32, i32) {
    %c0_i32 = arith.constant 0 : i32
    %c0_i32_0 = arith.constant 0 : i32
    return %arg0, %c0_i32 : i32, i32
  }
  func.func @transform_1(%arg0: i32) -> (i32, i32) {
    %c0_i32 = arith.constant 0 : i32
    %c0_i32_0 = arith.constant 0 : i32
    %c0_i32_1 = arith.constant 0 : i32
    return %c0_i32, %c0_i32_0 : i32, i32
  }
  func.func @transform_2(%arg0: i32) -> (i32, i32) {
    %c0_i32 = arith.constant 0 : i32
    %c0_i32_0 = arith.constant 0 : i32
    %c0_i32_1 = arith.constant 0 : i32
    return %c0_i32, %c0_i32_0 : i32, i32
  }
  func.func @transform_3(%arg0: i32) -> (i32, i32) {
    %c0_i32 = arith.constant 0 : i32
    %c0_i32_0 = arith.constant 0 : i32
    %c0_i32_1 = arith.constant 0 : i32
    return %c0_i32, %c0_i32_0 : i32, i32
  }
  func.func @transform_4(%arg0: i32) -> (i32, i32) {
    %c0_i32 = arith.constant 0 : i32
    %c0_i32_0 = arith.constant 0 : i32
    %c0_i32_1 = arith.constant 0 : i32
    return %c0_i32, %c0_i32_0 : i32, i32
  }
  func.func @transform_5(%arg0: i32) -> (i32, i32) {
    %c0_i32 = arith.constant 0 : i32
    %c0_i32_0 = arith.constant 0 : i32
    %c0_i32_1 = arith.constant 0 : i32
    return %c0_i32, %c0_i32_0 : i32, i32
  }
  func.func @transform_6(%arg0: i32) -> (i32, i32) {
    %c0_i32 = arith.constant 0 : i32
    %c0_i32_0 = arith.constant 0 : i32
    %c0_i32_1 = arith.constant 0 : i32
    return %c0_i32, %c0_i32_0 : i32, i32
  }
  func.func @transform_7(%arg0: i32) -> (i32, i32) {
    %c0_i32 = arith.constant 0 : i32
    %c0_i32_0 = arith.constant 0 : i32
    %c0_i32_1 = arith.constant 0 : i32
    return %c0_i32, %c0_i32_0 : i32, i32
  }
  func.func @transform_8(%arg0: i32) -> (i32, i32) {
    %c0_i32 = arith.constant 0 : i32
    %c0_i32_0 = arith.constant 0 : i32
    %c0_i32_1 = arith.constant 0 : i32
    return %c0_i32, %c0_i32_0 : i32, i32
  }
  func.func @transform_9(%arg0: i32) -> (i32, i32) {
    %c0_i32 = arith.constant 0 : i32
    %c0_i32_0 = arith.constant 0 : i32
    return %arg0, %c0_i32 : i32, i32
  }
}

</mosaic_0001>

<bundles_post_ra>
// kernel: encoder_layer_forward.1
= control target key start
LH: loop header
LB: loop body
LE: loop exit
PB: predicated region body
PF: predicated region fallthrough
CT: control target
= control target key end

     0   :  { %s667_s0 = inlined_call_operand.vmem [shape: f32[16,128], index: 0, kind: input, shape index: {}]   ;;  %s668_s1 = inlined_call_operand.vmem [shape: f32[1,128], index: 1, kind: input, shape index: {}]   ;;  %s669_s2 = inlined_call_operand.vmem [shape: f32[1,128], index: 2, kind: input, shape index: {}]   ;;  %s670_s3 = inlined_call_operand.vmem [shape: f32[1,128], index: 3, kind: input, shape index: {}]   ;;  %s671_s4 = inlined_call_operand.vmem [shape: f32[1,128], index: 4, kind: input, shape index: {}]   ;;  %s672_s5 = inlined_call_operand.vmem [shape: bf16[128,128], index: 5, kind: input, shape index: {}]   ;;  %s673_s6 = inlined_call_operand.vmem [shape: f32[1,128], index: 6, kind: input, shape index: {}]   ;;  %s674_s7 = inlined_call_operand.vmem [shape: bf16[128,128], index: 7, kind: input, shape index: {}]   ;;  %s675_s8 = inlined_call_operand.vmem [shape: f32[1,128], index: 8, kind: input, shape index: {}]   ;;  %s676_s9 = inlined_call_operand.hbm [shape: f32[16,128], index: 9, kind: output, shape index: {}]  }
   0x1   :  { %v72_v0 = vld [vmem:[%s667_s0] sm:$0xff]  ;;  %v73_v1 = vld [vmem:[%s667_s0 + $0x8] sm:$0xff] }
   0x2   :  { %74 = vadd.xlane.f32.xlu0 %v72_v0 }
   0x6   :  { %76 = vadd.xlane.f32.xlu0 %v73_v1 }
   0x7   :  { %14 = vsyncpa [#allocation3], 0  ;;  %v367_v17 = vld [vmem:[%s668_s1] ss:$0 sm:$0xff]  ;;  %v500_v29 = vmov 0.0   ;;  %v453_v38 = vld [vmem:[%s672_s5 + $0x8] sm:$0xff]  }
   0x8   :  { %v368_v19 = vld [vmem:[%s669_s2] ss:$0 sm:$0xff]  ;;  %407 = vmatprep.subr.bf16.mxu0 %v500_v29  ;;  %427 = vmatprep.subr.bf16.mxu1 %v500_v29  ;;  %v454_v39 = vld [vmem:[%s672_s5 + $0x10] sm:$0xff]   ;;  %v455_v40 = vld [vmem:[%s672_s5 + $0x18] sm:$0xff]   ;;  %vm501_vm0 = vmmov 0  }
   0x9   :  { %v452_v28 = vld [vmem:[%s672_s5] sm:$0xff]   ;;  %423 = vmatprep.mubr.msk.bf16.mxu0 %vm501_vm0, %v500_v29  ;;  %443 = vmatprep.mubr.msk.bf16.mxu1 %vm501_vm0, %v500_v29  ;;  %v457_v42 = vld [vmem:[%s672_s5 + $0x28] sm:$0xff]   ;;  %v458_v43 = vld [vmem:[%s672_s5 + $0x30] sm:$0xff]  }
   0xa   :  { %408 = vmatpush3.bf16.msra.mxu0 %v452_v28  ;;  %v456_v41 = vld [vmem:[%s672_s5 + $0x20] sm:$0xff]   ;;  %v459_v44 = vld [vmem:[%s672_s5 + $0x38] sm:$0xff]   ;;  %v461_v46 = vld [vmem:[%s674_s7 + $0x8] sm:$0xff]  }
   0xb   :  { %409 = vmatprep.subr.bf16.mxu0 %v500_v29  ;;  %v460_v45 = vld [vmem:[%s674_s7] sm:$0xff]   ;;  %v462_v47 = vld [vmem:[%s674_s7 + $0x10] sm:$0xff]   ;;  %v463_v48 = vld [vmem:[%s674_s7 + $0x18] sm:$0xff]  }
   0xc   :  { %428 = vmatpush3.bf16.msra.mxu1 %v460_v45  ;;  %v464_v49 = vld [vmem:[%s674_s7 + $0x20] sm:$0xff]   ;;  %v465_v50 = vld [vmem:[%s674_s7 + $0x28] sm:$0xff]  }
   0xd   :  { %429 = vmatprep.subr.bf16.mxu1 %v500_v29  ;;  %v369_v59 = vld [vmem:[%s670_s3] ss:$0 sm:$0xff] }
   0xe   :  { %410 = vmatpush3.bf16.msra.mxu0 %v453_v38  ;;  %v370_v63 = vld [vmem:[%s671_s4] ss:$0 sm:$0xff] }
   0xf   :  { %411 = vmatprep.subr.bf16.mxu0 %v500_v29 }
  0x10   :  { %430 = vmatpush3.bf16.msra.mxu1 %v461_v46 }
  0x11   :  { %431 = vmatprep.subr.bf16.mxu1 %v500_v29 }
  0x12   :  { %412 = vmatpush3.bf16.msra.mxu0 %v454_v39 }
  0x13   :  { %413 = vmatprep.subr.bf16.mxu0 %v500_v29 }
  0x14   :  { %432 = vmatpush3.bf16.msra.mxu1 %v462_v47 }
  0x15   :  { %433 = vmatprep.subr.bf16.mxu1 %v500_v29 }
  0x16   :  { %414 = vmatpush3.bf16.msra.mxu0 %v455_v40 }
  0x17   :  { %415 = vmatprep.subr.bf16.mxu0 %v500_v29 }
  0x18   :  { %434 = vmatpush3.bf16.msra.mxu1 %v463_v48 }
  0x19   :  { %435 = vmatprep.subr.bf16.mxu1 %v500_v29 }
  0x1a   :  { %416 = vmatpush3.bf16.msra.mxu0 %v456_v41 }
  0x1b   :  { %417 = vmatprep.subr.bf16.mxu0 %v500_v29 }
  0x1c   :  { %436 = vmatpush3.bf16.msra.mxu1 %v464_v49 }
  0x1d   :  { %437 = vmatprep.subr.bf16.mxu1 %v500_v29 }
  0x1e   :  { %418 = vmatpush3.bf16.msra.mxu0 %v457_v42 }
  0x1f   :  { %419 = vmatprep.subr.bf16.mxu0 %v500_v29 }
  0x20   :  { %438 = vmatpush3.bf16.msra.mxu1 %v465_v50 }
  0x21   :  { %439 = vmatprep.subr.bf16.mxu1 %v500_v29 }
  0x22   :  { %420 = vmatpush3.bf16.msra.mxu0 %v458_v43 }
  0x23   :  { %421 = vmatprep.subr.bf16.mxu0 %v500_v29 }
  0x26   :  { %422 = vmatpush3.bf16.msra.mxu0 %v459_v44 }
  0x8f   :  { %v75_v2 = vpop.xlane.xlu0 %74 }
  0x90   :  { %v79_v3 = vmul.f32 0.0078125, %v75_v2 }
  0x92   :  { %v81_v4 = vsub.f32 %v72_v0, %v79_v3 }
  0x93   :  { %v77_v5 = vpop.xlane.xlu0 %76 }
  0x94   :  { %v80_v6 = vmul.f32 0.0078125, %v77_v5  ;;  %v83_v7 = vmul.f32 %v81_v4, %v81_v4  ;;  %v467_v5 = vld [vmem:[%s674_s7 + $0x38] sm:$0xff]  }
  0x96   :  { %v82_v8 = vsub.f32 %v73_v1, %v80_v6  ;;  %85 = vadd.xlane.f32.xlu1 %v83_v7  ;;  %v371_v6 = vld [vmem:[%s673_s6] ss:$0 sm:$0xff] }
  0x98   :  { %v84_v9 = vmul.f32 %v82_v8, %v82_v8 }
  0x9a   :  { %87 = vadd.xlane.f32.xlu1 %v84_v9 }
 0x123   :  { %v86_v10 = vpop.xlane.xlu1 %85 }
 0x124   :  { %v89_v11 = vmul.f32 0.0078125, %v86_v10 }
 0x126   :  { %v91_v12 = vadd.f32 1e-05, %v89_v11 }
 0x127   :  { %v88_v13 = vpop.xlane.xlu1 %87 }
 0x128   :  { %468 = vrsqrt.f32 %v91_v12  ;;  %v90_v14 = vmul.f32 0.0078125, %v88_v13 }
 0x12a   :  { %v92_v15 = vadd.f32 1e-05, %v90_v14 }
 0x12c   :  { %470 = vrsqrt.f32 %v92_v15 }
 0x132   :  { %v469_v16 = vpop.eup %468 }
 0x133   :  { %v95_v18 = vmul.f32 %v469_v16, %v81_v4  ;;  %v466_v4 = vld [vmem:[%s674_s7 + $0x30] sm:$0xff]   ;;  %v380_v16 = vld [vmem:[%s675_s8] ss:$0 sm:$0xff]  ;;  %s502_s7 = smov [#allocation2]  }
 0x134   :  { %440 = vmatpush3.bf16.msra.mxu1 %v466_v4  ;;  %s356_s27 = sshll.u32 %s502_s7, 4  ;;  %s357_s27 = int_to_ptr.vmem [resolvable:$true] %s356_s27 }
 0x135   :  { %v103_v20 = vmul.f32 %v367_v17, %v95_v18  ;;  %441 = vmatprep.subr.bf16.mxu1 %v500_v29  ;;  %s476_s6 = scalar_lea.vmem %s357_s27, 256  ;;  %p481_p1 = scmp.lt.s32.totalorder %s357_s27, %s357_s27 }
 0x136   :  { %v471_v21 = vpop.eup %470  ;;  %p477_p0 = scmp.ne.s32.totalorder %s357_s27, %s476_s6  ;;  %p482_p2 = scmp.lt.s32.totalorder %s476_s6, %s476_s6 }
 0x137   :  { %v111_v22 = vadd.f32 %v368_v19, %v103_v20  ;;  %v96_v23 = vmul.f32 %v471_v21, %v82_v8 }
 0x138   :  { %442 = vmatpush3.bf16.msra.mxu1 %v467_v5  ;;  %p483_p3 = por %p482_p2, %p481_p1 }
 0x139   :  { %v567_v24 = vadd.f32 %v111_v22, %v72_v0  ;;  %v104_v25 = vmul.f32 %v367_v17, %v96_v23 }
 0x13a   :  { %p484_p4 = pnand %p483_p3, %p477_p0 }
 0x13b   :  { %115 = vadd.xlane.f32.xlu0 %v567_v24  ;;  %v112_v26 = vadd.f32 %v368_v19, %v104_v25 }
 0x13d   :  { %v570_v27 = vadd.f32 %v112_v26, %v73_v1 }
 0x13f   :  { %117 = vadd.xlane.f32.xlu1 %v570_v27 }
 0x1c8   :  { %v116_v30 = vpop.xlane.xlu0 %115 }
 0x1c9   :  { %v119_v31 = vmul.f32 0.0078125, %v116_v30 }
 0x1cb   :  { %v121_v32 = vsub.f32 %v567_v24, %v119_v31 }
 0x1cc   :  { %v118_v33 = vpop.xlane.xlu1 %117 }
 0x1cd   :  { %v120_v34 = vmul.f32 0.0078125, %v118_v33  ;;  %v123_v35 = vmul.f32 %v121_v32, %v121_v32 }
 0x1cf   :  { %v122_v36 = vsub.f32 %v570_v27, %v120_v34  ;;  %125 = vadd.xlane.f32.xlu0 %v123_v35 }
 0x1d1   :  { %v124_v37 = vmul.f32 %v122_v36, %v122_v36 }
 0x1d3   :  { %127 = vadd.xlane.f32.xlu1 %v124_v37 }
 0x25c   :  { %v126_v51 = vpop.xlane.xlu0 %125 }
 0x25d   :  { %v129_v52 = vmul.f32 0.0078125, %v126_v51 }
 0x25f   :  { %v131_v53 = vadd.f32 1e-06, %v129_v52 }
 0x260   :  { %v128_v54 = vpop.xlane.xlu1 %127 }
 0x261   :  { %472 = vrsqrt.f32 %v131_v53  ;;  %v130_v55 = vmul.f32 0.0078125, %v128_v54 }
 0x263   :  { %v132_v56 = vadd.f32 1e-06, %v130_v55 }
 0x265   :  { %474 = vrsqrt.f32 %v132_v56 }
 0x26b   :  { %v473_v57 = vpop.eup %472 }
 0x26c   :  { %v135_v58 = vmul.f32 %v473_v57, %v121_v32 }
 0x26e   :  { %v143_v62 = vmul.f32 %v369_v59, %v135_v58 }
 0x26f   :  { %v475_v60 = vpop.eup %474 }
 0x270   :  { %v136_v61 = vmul.f32 %v475_v60, %v122_v36  ;;  %v151_v1 = vadd.f32 %v370_v63, %v143_v62 }
 0x272   :  { %v144_v0 = vmul.f32 %v369_v59, %v136_v61 }
 0x274   :  { %v152_v2 = vadd.f32 %v370_v63, %v144_v0 }
 0x276   :  { %v153_v3 = vpack.c.bf16 %v152_v2, %v151_v1 }
 0x278   :  { %424 = vmatmul.mubr.bf16.vlgmr.msra.gmra.mrb[0].mxu0 %v153_v3 }
 0x34b   :  { %v242_v7 = vpop.f32.mrb[0].mxu0 }
 0x34c   :  { %v243_v8 = vadd.f32 %v371_v6, %v242_v7  ;;  %v425_v9 = vpop.f32.mrb[1].mxu0 }
 0x34d   :  { %v245_v10 = vpop.f32.mrb[2].mxu0 }
 0x34e   :  { %v246_v11 = vadd.f32 %v371_v6, %v245_v10  ;;  %v426_v12 = vpop.f32.mrb[3].mxu0  ;;  %v249_v13 = vmax.f32 %v243_v8, 0.0 }
 0x350   :  { %v250_v14 = vmax.f32 %v246_v11, 0.0 }
 0x352   :  { %v251_v15 = vpack.c.bf16 %v250_v14, %v249_v13 }
 0x354   :  { %444 = vmatmul.mubr.bf16.vlgmr.msra.gmra.mrb[0].mxu1 %v251_v15 }
 0x427   :  { %v340_v17 = vpop.f32.mrb[0].mxu1 }
 0x428   :  { %v341_v18 = vadd.f32 %v380_v16, %v340_v17  ;;  %v445_v19 = vpop.f32.mrb[1].mxu1 }
 0x429   :  { %v343_v20 = vpop.f32.mrb[2].mxu1 }
 0x42a   :  { %v347_v21 = vadd.f32 %v341_v18, %v567_v24  ;;  %v344_v22 = vadd.f32 %v380_v16, %v343_v20  ;;  %v446_v23 = vpop.f32.mrb[3].mxu1 }
 0x42c   :  { %349 = vst [vmem:[#allocation2] sm:$0xff] %v347_v21  ;;  %v348_v25 = vadd.f32 %v344_v22, %v570_v27 }
 0x42e   :  { %350 = vst [vmem:[#allocation2 + $0x8] sm:$0xff] %v348_v25 }
 0x42f   :  { %487 = shalt.err (!%p484_p4)
}
 0x430   :  { %s488_s29 = scalar_lea.hbm %s676_s9, 256 }
 0x431   :  { %p489_p5 = scmp.ne.s32.totalorder %s676_s9, %s488_s29  ;;  %p492_p6 = scmp.lt.u32.totalorder %s488_s29, %s676_s9 }
 0x433   :  { %p494_p7 = pnand %p492_p6, %p489_p5 }
 0x435   :  { %497 = shalt.err (!%p494_p7)
}
 0x436   :  { %s503_s0 = smov 128   ;;  %s504_s13 = smov 8  }
 0x437   :  { %362 = dma.vmem_to_hbm [thread:$0]  %s357_s27, 256, %s676_s9, [#allocation3], %s503_s0, %s503_s0, %s504_s13  }
 0x438   :  { %498 = dma.done.wait [#allocation3], 256  }
 0x439   :  { %499 = vsyncadd [#allocation3], 4294967040 }
 0x43a   :  { %366 = vsyncpa [#allocation3], 1 }

</bundles_post_ra>
